<compile_context>
chip_gen: v6e
topology: v6e:2x2x1
jax: 0.10.0
libtpu: 0.0.40
codegen_flags: <defaults>
</compile_context>

<pallas_src>
import jax
import jax.numpy as jnp
import numpy as np
from jax.experimental import pallas as pl
from jax.experimental.pallas import tpu as pltpu


def classifier_kernel(ids_ref,           # [B_pad*T]      int32, SMEM (flat index b*T+t)
                      mask_ref, z_ref,   # [B_blk, T]     f32,   VMEM
                      emb_ref,           # [V_pad, E]     f32,   VMEM (resident table)
                      lin_w_ref,         # [E, O_pad]     bf16,  VMEM (resident)
                      lin_b_ref,         # [1, O_pad]     f32,   VMEM (resident)
                      out_ref,           # [B_blk, O_pad] f32,   VMEM (lane-dense)
                      gbuf):             # [B_blk*T, E]   f32,   VMEM scratch (gathered rows)
    B_blk, T = mask_ref.shape
    E = emb_ref.shape[1]
    base = pl.program_id(0) * (B_blk * T)

    # ---- embed_layer: gather rows from the VMEM-resident table --------------------
    # (Dropout is identity at eval time.)  Pure on-chip loads/stores: no DMA, no waits.
    @pl.loop(0, B_blk * T)
    def _gather(i):
        row = ids_ref[base + i]
        gbuf[pl.ds(i, 1), :] = emb_ref[pl.ds(row, 1), :]

    # ---- z masking (VPU, f32) ------------------------------------------------------
    mask = mask_ref[...]                                   # [B_blk, T]
    z = z_ref[...]                                         # [B_blk, T]
    # z_mask * (z_mask > 0) == relu(z_mask) because mask is {0,1}.
    w = jnp.maximum(mask * z, 0.0)                         # [B_blk, T]
    lengths = jnp.sum(mask, axis=1, keepdims=True)         # [B_blk, 1]
    inv_len = 1.0 / jnp.maximum(lengths, 1.0)              # exact; tiny [B_blk,1] divide
    w_scaled = w * inv_len                                 # fold 1/len into the weights

    # ---- encoder (BOW): masked weighted mean over time ----------------------------
    emb = gbuf[...].reshape(B_blk, T, E)                   # [B_blk, T, E] f32
    final = jnp.sum(emb * w_scaled[:, :, None], axis=1)    # [B_blk, E]
    # (For large T, express this as jnp.einsum('bt,bte->be', ...) to run on the MXU.)

    # ---- output_layer: Dropout(identity) -> Linear(E,O_pad) bf16 MXU -> Sigmoid ----
    logits = jnp.dot(final.astype(jnp.bfloat16), lin_w_ref[...],
                     preferred_element_type=jnp.float32) + lin_b_ref[...]
    out_ref[...] = pl.reciprocal(1.0 + jnp.exp(-logits), approx=True)   # EUP sigmoid


def _round_up(x, m):
    return (x + m - 1) // m * m


def classifier_forward(x, mask, z, emb_w, lin_w, lin_b, *, max_block_b=128):
    """y = sigmoid(Linear(masked_weighted_mean(Embed(x), mask, z))) — eval-time forward."""
    B, T = x.shape
    V, E = emb_w.shape
    O = lin_w.shape[1]
    if z is None:
        z = jnp.ones((B, T), dtype=jnp.float32)   # z=None path of the reference forward

    # Small batches run as ONE grid step (no 8-row fragmentation just to feed cores);
    # large batches tile at 128 rows to fill the MXU M dim.  VMEM budget: gbuf is
    # block_b*T*E*4 bytes plus double-buffered mask/z/out blocks — on v7x (64 MiB
    # physical / 32 MiB scoped default) halve block_b or gather in bf16 before
    # v5e/v6e would need it.
    block_b = min(max_block_b, _round_up(B, 8))
    B_pad = _round_up(B, block_b)
    O_pad = _round_up(O, 128)                      # lane-dense output stores
    V_pad = _round_up(V, 8)                        # sublane-aligned table
    pb = B_pad - B

    ids_flat = jnp.pad(x.astype(jnp.int32), ((0, pb), (0, 0))).reshape(-1)   # 1-D SMEM ids
    mask_p = jnp.pad(mask.astype(jnp.float32), ((0, pb), (0, 0)))
    z_p = jnp.pad(z.astype(jnp.float32), ((0, pb), (0, 0)))
    emb_p = jnp.pad(emb_w.astype(jnp.float32), ((0, V_pad - V), (0, 0)))
    lin_w_p = jnp.pad(lin_w.astype(jnp.float32),
                      ((0, 0), (0, O_pad - O))).astype(jnp.bfloat16)         # bf16 MXU operand
    lin_b_p = jnp.pad(lin_b.reshape(1, -1).astype(jnp.float32), ((0, 0), (0, O_pad - O)))

    out = pl.pallas_call(
        classifier_kernel,
        out_shape=jax.ShapeDtypeStruct((B_pad, O_pad), jnp.float32),
        grid_spec=pltpu.PrefetchScalarGridSpec(
            num_scalar_prefetch=1,                   # flat token ids -> SMEM
            grid=(B_pad // block_b,),
            in_specs=[
                pl.BlockSpec((block_b, T), lambda i, ids: (i, 0)),    # mask
                pl.BlockSpec((block_b, T), lambda i, ids: (i, 0)),    # z
                pl.BlockSpec((V_pad, E), lambda i, ids: (0, 0)),      # emb table, VMEM-resident
                pl.BlockSpec((E, O_pad), lambda i, ids: (0, 0)),      # lin_w (bf16), resident
                pl.BlockSpec((1, O_pad), lambda i, ids: (0, 0)),      # lin_b, resident
            ],
            out_specs=pl.BlockSpec((block_b, O_pad), lambda i, ids: (i, 0)),
            scratch_shapes=[
                pltpu.VMEM((block_b * T, E), jnp.float32),            # gathered rows
            ],
        ),
        compiler_params=pltpu.CompilerParams(
            dimension_semantics=("parallel",),       # megacore sharding when grid > 1
            vmem_limit_bytes=32 * 1024 * 1024,       # explicit budget, fits all gens
        ),
    )(ids_flat, mask_p, z_p, emb_p, lin_w_p, lin_b_p)

    return out[:B, :O]


if __name__ == "__main__":
    B, T, V, E, O = 16, 8, 50, 32, 1
    key = jax.random.PRNGKey(0)
    k1, k2, k3, k4, k5 = jax.random.split(key, 5)

    x = jax.random.randint(k1, (B, T), 0, V, dtype=jnp.int32)
    lens = jnp.concatenate([jnp.full((B // 2,), T, dtype=jnp.int32),
                            jnp.full((B - B // 2,), T - 3, dtype=jnp.int32)])
    mask = (jax.lax.broadcasted_iota(jnp.int32, (B, T), 1) < lens[:, None]).astype(jnp.float32)
    z = jax.random.uniform(k2, (B, T), dtype=jnp.float32)               # soft rationale
    emb_w = jax.random.normal(k3, (V, E), dtype=jnp.float32) * 0.1
    lin_w = jax.random.normal(k4, (E, O), dtype=jnp.float32) * (1.0 / np.sqrt(E))
    lin_b = jax.random.normal(k5, (1, O), dtype=jnp.float32) * 0.01

    y = classifier_forward(x, mask, z, emb_w, lin_w, lin_b)
    y = jax.block_until_ready(y)

    # pure-JAX f32 reference (matches the PyTorch eval-time forward)
    emb_ref = emb_w[x]
    z_mask = mask * z
    w_ref = z_mask * (z_mask > 0.0)
    final_ref = jnp.sum(emb_ref * w_ref[..., None], axis=1) / jnp.maximum(
        jnp.sum(mask, axis=1, keepdims=True), 1.0)
    y_ref = 1.0 / (1.0 + jnp.exp(-(final_ref @ lin_w + lin_b)))
    # bf16 output matmul + EUP approx reciprocal in the sigmoid -> small tolerance
    np.testing.assert_allclose(np.asarray(y), np.asarray(y_ref), rtol=2e-3, atol=2e-3)

    print("KERNEL_OK")
</pallas_src>

<mosaic_0001>
module attributes {stable_mosaic.version = 11 : i64} {
  func.func @classifier_kernel(%arg0: i32, %arg1: memref<128xi32, #tpu.memory_space<smem>>, %arg2: memref<16x8xf32, #tpu.memory_space<vmem>>, %arg3: memref<16x8xf32, #tpu.memory_space<vmem>>, %arg4: memref<56x32xf32, #tpu.memory_space<vmem>>, %arg5: memref<32x128xbf16, #tpu.memory_space<vmem>>, %arg6: memref<1x128xf32, #tpu.memory_space<vmem>>, %arg7: memref<16x128xf32, #tpu.memory_space<vmem>>, %arg8: memref<128x32xf32, #tpu.memory_space<vmem>>) attributes {dimension_semantics = [#tpu.dimension_semantics<parallel>], iteration_bounds = array<i64: 1>, scalar_prefetch = 1 : i64, scratch_operands = 1 : i64, tpu.core_type = #tpu.core_type<tc>, window_params = [{transform_indices = @transform_0, window_bounds = array<i64: 16, 8>}, {transform_indices = @transform_1, window_bounds = array<i64: 16, 8>}, {pipeline_mode = #tpu.pipeline_mode<synchronous>, transform_indices = @transform_2, window_bounds = array<i64: 56, 32>}, {pipeline_mode = #tpu.pipeline_mode<synchronous>, transform_indices = @transform_3, window_bounds = array<i64: 32, 128>}, {pipeline_mode = #tpu.pipeline_mode<synchronous>, transform_indices = @transform_4, window_bounds = array<i64: 1, 128>}, {transform_indices = @transform_5, window_bounds = array<i64: 16, 128>}]} {
    %c128_i32 = arith.constant 128 : i32
    %0 = arith.muli %arg0, %c128_i32 : i32
    %c0_i32 = arith.constant 0 : i32
    %c128_i32_0 = arith.constant 128 : i32
    %1 = arith.addi %c0_i32, %c128_i32_0 : i32
    %c1_i32 = arith.constant 1 : i32
    scf.for %arg9 = %c0_i32 to %1 step %c1_i32  : i32 {
      %c1_i32_20 = arith.constant 1 : i32
      %34 = arith.muli %arg9, %c1_i32_20 : i32
      %c0_i32_21 = arith.constant 0 : i32
      %35 = arith.addi %c0_i32_21, %34 : i32
      %36 = arith.addi %0, %35 : i32
      %37 = arith.index_cast %36 : i32 to index
      %38 = memref.load %arg1[%37] : memref<128xi32, #tpu.memory_space<smem>>
      %39 = arith.index_cast %38 : i32 to index
      %c0_22 = arith.constant 0 : index
      %40 = vector.load %arg4[%39, %c0_22] : memref<56x32xf32, #tpu.memory_space<vmem>>, vector<1x32xf32>
      %41 = arith.index_cast %35 : i32 to index
      %c0_23 = arith.constant 0 : index
      %42 = vector.load %arg8[%41, %c0_23] : memref<128x32xf32, #tpu.memory_space<vmem>>, vector<1x32xf32>
      tpu.vector_store %arg8[%41, %c0_23], %40 {strides = array<i32>} : memref<128x32xf32, #tpu.memory_space<vmem>>, vector<1x32xf32>,
    }
    %c128_i32_1 = arith.constant 128 : i32
    %c0 = arith.constant 0 : index
    %c0_2 = arith.constant 0 : index
    %2 = vector.load %arg2[%c0, %c0_2] : memref<16x8xf32, #tpu.memory_space<vmem>>, vector<16x8xf32>
    %c0_3 = arith.constant 0 : index
    %c0_4 = arith.constant 0 : index
    %3 = vector.load %arg3[%c0_3, %c0_4] : memref<16x8xf32, #tpu.memory_space<vmem>>, vector<16x8xf32>
    %4 = arith.mulf %2, %3 : vector<16x8xf32>
    %cst = arith.constant 0.000000e+00 : f32
    %5 = vector.broadcast %cst : f32 to vector<16x8xf32>
    %6 = arith.maximumf %4, %5 : vector<16x8xf32>
    %cst_5 = arith.constant dense<0.000000e+00> : vector<16xf32>
    %7 = vector.multi_reduction <add>, %2, %cst_5 [1] : vector<16x8xf32> to vector<16xf32>
    %8 = vector.shape_cast %7 : vector<16xf32> to vector<16x1xf32>
    %cst_6 = arith.constant 1.000000e+00 : f32
    %9 = vector.broadcast %cst_6 : f32 to vector<16x1xf32>
    %10 = arith.maximumf %8, %9 : vector<16x1xf32>
    %cst_7 = arith.constant 1.000000e+00 : f32
    %11 = vector.broadcast %cst_7 : f32 to vector<16x1xf32>
    %12 = arith.divf %11, %10 : vector<16x1xf32>
    %13 = vector.broadcast %12 : vector<16x1xf32> to vector<16x8xf32>
    %14 = arith.mulf %6, %13 : vector<16x8xf32>
    %c0_8 = arith.constant 0 : index
    %c0_9 = arith.constant 0 : index
    %15 = vector.load %arg8[%c0_8, %c0_9] : memref<128x32xf32, #tpu.memory_space<vmem>>, vector<128x32xf32>
    %16 = vector.shape_cast %15 : vector<128x32xf32> to vector<16x8x32xf32>
    %17 = vector.shape_cast %14 : vector<16x8xf32> to vector<16x8x1xf32>
    %18 = vector.broadcast %17 : vector<16x8x1xf32> to vector<16x8x32xf32>
    %19 = arith.mulf %16, %18 : vector<16x8x32xf32>
    %cst_10 = arith.constant dense<0.000000e+00> : vector<16x32xf32>
    %20 = vector.multi_reduction <add>, %19, %cst_10 [1] : vector<16x8x32xf32> to vector<16x32xf32>
    %21 = arith.truncf %20 : vector<16x32xf32> to vector<16x32xbf16>
    %c0_11 = arith.constant 0 : index
    %c0_12 = arith.constant 0 : index
    %22 = vector.load %arg5[%c0_11, %c0_12] : memref<32x128xbf16, #tpu.memory_space<vmem>>, vector<32x128xbf16>
    %cst_13 = arith.constant dense<0.000000e+00> : vector<16x128xf32>
    %23 = tpu.matmul %21, %22, %cst_13 {dimension_numbers = #tpu.dot_dimension_numbers<[1], [0], [0], [1], [0, 0, 1, 1], [], []>} : vector<16x32xbf16>, vector<32x128xbf16>, vector<16x128xf32> -> vector<16x128xf32>
    %c0_14 = arith.constant 0 : index
    %c0_15 = arith.constant 0 : index
    %24 = vector.load %arg6[%c0_14, %c0_15] : memref<1x128xf32, #tpu.memory_space<vmem>>, vector<1x128xf32>
    %25 = vector.broadcast %24 : vector<1x128xf32> to vector<16x128xf32>
    %26 = arith.addf %23, %25 : vector<16x128xf32>
    %cst_16 = arith.constant 0.000000e+00 : f32
    %27 = vector.broadcast %cst_16 : f32 to vector<16x128xf32>
    %28 = arith.subf %27, %26 : vector<16x128xf32>
    %29 = math.exp %28 : vector<16x128xf32>
    %cst_17 = arith.constant 1.000000e+00 : f32
    %30 = vector.broadcast %cst_17 : f32 to vector<16x128xf32>
    %31 = arith.addf %30, %29 : vector<16x128xf32>
    %32 = tpu.reciprocal %31 {approx = true} : vector<16x128xf32> -> vector<16x128xf32>
    %c0_18 = arith.constant 0 : index
    %c0_19 = arith.constant 0 : index
    %33 = vector.load %arg7[%c0_18, %c0_19] : memref<16x128xf32, #tpu.memory_space<vmem>>, vector<16x128xf32>
    tpu.vector_store %arg7[%c0_18, %c0_19], %32 {strides = array<i32>} : memref<16x128xf32, #tpu.memory_space<vmem>>, vector<16x128xf32>,
    return
  }
  func.func @transform_0(%arg0: i32, %arg1: memref<128xi32, #tpu.memory_space<smem>>) -> (i32, i32) {
    %c0_i32 = arith.constant 0 : i32
    %c0_i32_0 = arith.constant 0 : i32
    return %arg0, %c0_i32 : i32, i32
  }
  func.func @transform_1(%arg0: i32, %arg1: memref<128xi32, #tpu.memory_space<smem>>) -> (i32, i32) {
    %c0_i32 = arith.constant 0 : i32
    %c0_i32_0 = arith.constant 0 : i32
    return %arg0, %c0_i32 : i32, i32
  }
  func.func @transform_2(%arg0: i32, %arg1: memref<128xi32, #tpu.memory_space<smem>>) -> (i32, i32) {
    %c0_i32 = arith.constant 0 : i32
    %c0_i32_0 = arith.constant 0 : i32
    %c0_i32_1 = arith.constant 0 : i32
    return %c0_i32, %c0_i32_0 : i32, i32
  }
  func.func @transform_3(%arg0: i32, %arg1: memref<128xi32, #tpu.memory_space<smem>>) -> (i32, i32) {
    %c0_i32 = arith.constant 0 : i32
    %c0_i32_0 = arith.constant 0 : i32
    %c0_i32_1 = arith.constant 0 : i32
    return %c0_i32, %c0_i32_0 : i32, i32
  }
  func.func @transform_4(%arg0: i32, %arg1: memref<128xi32, #tpu.memory_space<smem>>) -> (i32, i32) {
    %c0_i32 = arith.constant 0 : i32
    %c0_i32_0 = arith.constant 0 : i32
    %c0_i32_1 = arith.constant 0 : i32
    return %c0_i32, %c0_i32_0 : i32, i32
  }
  func.func @transform_5(%arg0: i32, %arg1: memref<128xi32, #tpu.memory_space<smem>>) -> (i32, i32) {
    %c0_i32 = arith.constant 0 : i32
    %c0_i32_0 = arith.constant 0 : i32
    return %arg0, %c0_i32 : i32, i32
  }
}

</mosaic_0001>

<bundles_post_ra>
// kernel: tpu_custom_call.1
= control target key start
LH: loop header
LB: loop body
LE: loop exit
PB: predicated region body
PF: predicated region fallthrough
CT: control target
= control target key end

     0   :  { %s699_s0 = inlined_call_operand.vmem [shape: s32[128], index: 0, kind: input, shape index: {}]   ;;  %s700_s1 = inlined_call_operand.vmem [shape: f32[16,8], index: 1, kind: input, shape index: {}]   ;;  %s701_s2 = inlined_call_operand.vmem [shape: f32[16,8], index: 2, kind: input, shape index: {}]   ;;  %s702_s3 = inlined_call_operand.vmem [shape: f32[56,32], index: 3, kind: input, shape index: {}]   ;;  %s703_s4 = inlined_call_operand.vmem [shape: bf16[32,128], index: 4, kind: input, shape index: {}]   ;;  %s704_s5 = inlined_call_operand.vmem [shape: f32[1,128], index: 5, kind: input, shape index: {}]   ;;  %s705_s6 = inlined_call_operand.hbm [shape: f32[16,128], index: 6, kind: output, shape index: {}]  }
   0x1   :  { %s11_s23 = sshll.u32 %s699_s0, 4  ;;  %s12_s23 = int_to_ptr.vmem [resolvable:$true] %s11_s23 }
   0x2   :  { %s538_s24 = scalar_lea.vmem %s12_s23, 16  ;;  %p543_p1 = scmp.lt.s32.totalorder %s12_s23, %s12_s23 }
   0x3   :  { %p539_p0 = scmp.ne.s32.totalorder %s12_s23, %s538_s24  ;;  %p544_p2 = scmp.lt.s32.totalorder %s538_s24, %s538_s24 }
   0x5   :  { %p545_p3 = por %p544_p2, %p543_p1 }
   0x7   :  { %p546_p4 = pnand %p545_p3, %p539_p0 }
   0x9   :  { %549 = shalt.err (!%p546_p4)  }
   0xa   :  { %s582_s25 = smov [#allocation4]  }
   0xb   :  { %14 = dma.vmem_to_smem %s12_s23, 16, %s582_s25, [#allocation3] }
   0xc   :  { %574 = dma.done.wait [#allocation3], 16 }
   0xd   :  { %575 = vsyncadd [#allocation3], 4294967280 }
   0xe   :  { %16 = sfence }
   0xf   :  { %17 = vsyncpa [#allocation6], 0  ;;  %s578_s26 = smov 0  }
  0x10 LB: > { %s37_s27 = sld [smem:[#allocation4 + %s580_s26]]  ;;  %vm41_vm0 = vcmask 253952   ;;  %s40_s30 = scalar_lea.vmem [#allocation2], %s580_s26  ;;  %s580_s26 = sphi %s578_s26, %s35_s26  }
  0x11   : > { %s35_s26 = sadd.s32 1, %s580_s26  }
  0x12   : > { %p32_p5 = scmp.ge.s32.totalorder %s35_s26, 128  }
  0x13   :  { %v43_v1 = vld [vmem:[%s700_s1] sm:$0xff] (%p32_p5)  ;;  %vm51_vm1 = vcmask (%p32_p5), 64512   ;;  %v44_v2 = vld [vmem:[%s700_s1 + $0x8] sm:$0xff] (%p32_p5)  ;;  %v82_v10 = vlaneseq (%p32_p5)  ;;  %v583_v46 = vmov (%p32_p5), 0.0   ;;  %vm584_vm2 = vmmov (%p32_p5), 0  }
  0x14   :  { %34 = sbr.rel (!%p32_p5) target bundleno = 16 (0x10), region = 49  ;;  %v52_v3 = vsel (%p32_p5), %vm51_vm1, %v43_v1, 0.0  ;;  %v55_v4 = vsel (%p32_p5), %vm51_vm1, %v44_v2, 0.0  ;;  %v45_v9 = vld [vmem:[%s701_s2] sm:$0xff] (%p32_p5)  ;;  %v46_v12 = vld [vmem:[%s701_s2 + $0x8] sm:$0xff] (%p32_p5)  ;;  %502 = vmatprep.subr.bf16.mxu0 (%p32_p5), %v583_v46  ;;  %506 = vmatprep.mubr.msk.bf16.mxu0 (%p32_p5), %vm584_vm2, %v583_v46  ;;  %vm210_vm3 = vcmask (%p32_p5), 261120  }
  0x15   :  { %53 = vadd.xlane.f32.xlu0 (%p32_p5), %v52_v3  ;;  %v47_v11 = vmul.f32 (%p32_p5), %v45_v9, %v43_v1  ;;  %v83_v13 = vshrl.u32 (%p32_p5), %v82_v10, 7  ;;  %v48_v15 = vmul.f32 (%p32_p5), %v46_v12, %v44_v2  ;;  %v524_v45 = vld [vmem:[%s703_s4 + $0x8] sm:$0xff] (%p32_p5)   ;;  %v525_v47 = vld [vmem:[%s703_s4] sm:$0xff] (%p32_p5)   ;;  %vm382_vm4 = vcmask (%p32_p5), 1041409  }
  0x16   : > { %s38_s29 = scalar_lea.vmem %s702_s3, %s37_s27  ;;  %503 = vmatpush3.bf16.msra.mxu0 (%p32_p5), %v524_v45  ;;  %vm384_vm5 = vcmask (%p32_p5), 1042434   ;;  %vm386_vm6 = vcmask (%p32_p5), 1043459   ;;  %vm388_vm7 = vcmask (%p32_p5), 1044484   ;;  %vm390_vm8 = vcmask (%p32_p5), 1045509  }
  0x17   : > { %v39_v0 = vld [vmem:[%s38_s29] sm:$0x1]  ;;  %v49_v14 = vmax.f32 (%p32_p5), %v47_v11, 0.0  ;;  %v84_v16 = vsub.s32 (%p32_p5), 0, %v83_v13  ;;  %v50_v18 = vmax.f32 (%p32_p5), %v48_v15, 0.0  ;;  %v91_v21 = vsub.s32 (%p32_p5), 1, %v83_v13  ;;  %504 = vmatprep.subr.bf16.mxu0 (%p32_p5), %v583_v46 }
  0x18   : > { %42 = vst.msk [vmem:[%s40_s30] sm:$0x1] %vm41_vm0, %v39_v0  ;;  %v112_v26 = vsub.s32 (%p32_p5), 4, %v83_v13  ;;  %v98_v29 = vsub.s32 (%p32_p5), 2, %v83_v13  ;;  %v119_v30 = vsub.s32 (%p32_p5), 5, %v83_v13  ;;  %v126_v33 = vsub.s32 (%p32_p5), 6, %v83_v13 }
  0x19   :  { %56 = vadd.xlane.f32.xlu0 %v55_v4  ;;  %v105_v36 = vsub.s32 3, %v83_v13  ;;  %v133_v37 = vsub.s32 7, %v83_v13  ;;  %vm392_vm9 = vcmask 1046534   ;;  %vm394_vm10 = vcmask 1047559  }
  0x1a   :  { %505 = vmatpush3.bf16.msra.mxu0 %v525_v47 }
  0x1f   :  { %v66_v48 = vld [vmem:[#allocation2] sm:$0xff]  ;;  %v67_v52 = vld [vmem:[#allocation2 + $0x8] sm:$0xff]  ;;  %v69_v46 = vld [vmem:[#allocation2 + $0x18] sm:$0xff] }
  0x20   :  { %v74_v51 = vld [vmem:[#allocation2 + $0x40] sm:$0xff]  ;;  %v75_v60 = vld [vmem:[#allocation2 + $0x48] sm:$0xff] }
  0x21   :  { %v78_v59 = vld [vmem:[#allocation2 + $0x60] sm:$0xff]  ;;  %v79_v10 = vld [vmem:[#allocation2 + $0x68] sm:$0xff] }
  0x9e   :  { %v54_v5 = vpop.xlane.xlu0 %53 }
  0x9f   :  { %v58_v6 = vmax.f32 %v54_v5, 1.0 }
  0xa1   :  { %526 = vrcp.f32 %v58_v6 }
  0xa2   :  { %v57_v7 = vpop.xlane.xlu0 %56 }
  0xa3   :  { %v59_v8 = vmax.f32 %v57_v7, 1.0 }
  0xa5   :  { %528 = vrcp.f32 %v59_v8 }
  0xae   :  { %v527_v17 = vpop.eup %526 }
  0xaf   :  { %v64_v19 = vmul.f32 %v527_v17, %v49_v14  ;;  %v68_v14 = vld [vmem:[#allocation2 + $0x10] sm:$0xff] }
  0xb1   :  { %v85_v20 = vrot.slane %v64_v19, %v84_v16  ;;  %v92_v25 = vrot.slane %v64_v19, %v91_v21  ;;  %v99_v32 = vrot.slane %v64_v19, %v98_v29  ;;  %v106_v39 = vrot.slane %v64_v19, %v105_v36 }
  0xb2   :  { %v529_v22 = vpop.eup %528  ;;  %v113_v41 = vrot.slane %v64_v19, %v112_v26  ;;  %v120_v42 = vrot.slane %v64_v19, %v119_v30  ;;  %v127_v43 = vrot.slane %v64_v19, %v126_v33  ;;  %v134_v44 = vrot.slane %v64_v19, %v133_v37 }
  0xb3   :  { %v65_v23 = vmul.f32 %v529_v22, %v50_v18  ;;  %87 = vbcast.lane.b32.xlu1 %v85_v20, 256 }
  0xb5   :  { %v141_v24 = vrot.slane %v65_v23, %v84_v16  ;;  %v169_v27 = vrot.slane %v65_v23, %v112_v26  ;;  %v148_v28 = vrot.slane %v65_v23, %v91_v21  ;;  %v176_v31 = vrot.slane %v65_v23, %v119_v30  ;;  %v76_v30 = vld [vmem:[#allocation2 + $0x50] sm:$0xff] }
  0xb6   :  { %v183_v34 = vrot.slane %v65_v23, %v126_v33  ;;  %v155_v35 = vrot.slane %v65_v23, %v98_v29  ;;  %v190_v38 = vrot.slane %v65_v23, %v133_v37  ;;  %v162_v40 = vrot.slane %v65_v23, %v105_v36 }
  0xb7   :  { %143 = vbcast.lane.b32.xlu0 %v141_v24, 256  ;;  %94 = vbcast.lane.b32.xlu1 %v92_v25, 256 }
  0xbb   :  { %171 = vbcast.lane.b32.xlu0 %v169_v27, 256  ;;  %150 = vbcast.lane.b32.xlu1 %v148_v28, 256  ;;  %v80_v28 = vld [vmem:[#allocation2 + $0x70] sm:$0xff] }
  0xbf   :  { %178 = vbcast.lane.b32.xlu0 %v176_v31, 256  ;;  %101 = vbcast.lane.b32.xlu1 %v99_v32, 256 }
  0xc3   :  { %185 = vbcast.lane.b32.xlu0 %v183_v34, 256  ;;  %157 = vbcast.lane.b32.xlu1 %v155_v35, 256 }
  0xc7   :  { %192 = vbcast.lane.b32.xlu0 %v190_v38, 256  ;;  %108 = vbcast.lane.b32.xlu1 %v106_v39, 256 }
  0xcb   :  { %164 = vbcast.lane.b32.xlu1 %v162_v40, 256 }
  0xcf   :  { %115 = vbcast.lane.b32.xlu1 %v113_v41, 256 }
  0xd3   :  { %122 = vbcast.lane.b32.xlu1 %v120_v42, 256  ;;  %v81_v42 = vld [vmem:[#allocation2 + $0x78] sm:$0xff] }
  0xd7   :  { %129 = vbcast.lane.b32.xlu1 %v127_v43, 256 }
  0xdb   :  { %136 = vbcast.lane.b32.xlu1 %v134_v44, 256 }
 0x125   :  { %v88_v49 = vpop.permute.xlu1 %87 }
 0x126   :  { %v194_v50 = vmul.f32 %v88_v49, %v66_v48 }
 0x128   :  { %v211_v53 = vsel %vm210_vm3, %v194_v50, 0.0 }
 0x129   :  { %v144_v54 = vpop.permute.xlu0 %143  ;;  %v95_v55 = vpop.permute.xlu1 %94  ;;  %v212_v56 = vrot.slane %v211_v53, 4 }
 0x12a   :  { %v202_v57 = vmul.f32 %v144_v54, %v74_v51  ;;  %v195_v58 = vmul.f32 %v95_v55, %v67_v52 }
 0x12b   :  { %v213_v3 = vadd.f32 %v212_v56, %v211_v53 }
 0x12c   :  { %v267_v61 = vsel %vm210_vm3, %v202_v57, 0.0  ;;  %v218_v62 = vsel %vm210_vm3, %v195_v58, 0.0 }
 0x12d   :  { %v268_v63 = vrot.slane %v267_v61, 4  ;;  %v219_v0 = vrot.slane %v218_v62, 4  ;;  %v172_v1 = vpop.permute.xlu0 %171  ;;  %v151_v2 = vpop.permute.xlu1 %150  ;;  %v214_v16 = vrot.slane %v213_v3, 2 }
 0x12e   :  { %v206_v4 = vmul.f32 %v172_v1, %v78_v59  ;;  %v203_v5 = vmul.f32 %v151_v2, %v75_v60 }
 0x12f   :  { %v269_v6 = vadd.f32 %v268_v63, %v267_v61  ;;  %v220_v7 = vadd.f32 %v219_v0, %v218_v62  ;;  %v215_v26 = vadd.f32 %v214_v16, %v213_v3  ;;  %v77_v62 = vld [vmem:[#allocation2 + $0x58] sm:$0xff]  ;;  %v70_v3 = vld [vmem:[#allocation2 + $0x20] sm:$0xff] }
 0x130   :  { %v295_v8 = vsel %vm210_vm3, %v206_v4, 0.0  ;;  %v274_v9 = vsel %vm210_vm3, %v203_v5, 0.0 }
 0x131   :  { %v270_v11 = vrot.slane %v269_v6, 2  ;;  %v296_v12 = vrot.slane %v295_v8, 4  ;;  %v179_v13 = vpop.permute.xlu0 %178  ;;  %v102_v15 = vpop.permute.xlu1 %101  ;;  %v221_v17 = vrot.slane %v220_v7, 2  ;;  %v275_v18 = vrot.slane %v274_v9, 4 }
 0x132   :  { %v207_v19 = vmul.f32 %v179_v13, %v79_v10  ;;  %v196_v21 = vmul.f32 %v102_v15, %v68_v14  ;;  %v216_v37 = vrot.slane %v215_v26, 1 }
 0x133   :  { %v276_v20 = vadd.f32 %v275_v18, %v274_v9  ;;  %v271_v22 = vadd.f32 %v270_v11, %v269_v6  ;;  %v297_v23 = vadd.f32 %v296_v12, %v295_v8  ;;  %v222_v27 = vadd.f32 %v221_v17, %v220_v7 }
 0x134   :  { %v302_v29 = vsel %vm210_vm3, %v207_v19, 0.0  ;;  %v225_v32 = vsel %vm210_vm3, %v196_v21, 0.0  ;;  %v656_v52 = vadd.f32 %v216_v37, %v215_v26  ;;  %v71_v21 = vld [vmem:[#allocation2 + $0x28] sm:$0xff] }
 0x135   :  { %v186_v24 = vpop.permute.xlu0 %185  ;;  %v158_v25 = vpop.permute.xlu1 %157  ;;  %v277_v31 = vrot.slane %v276_v20, 2  ;;  %v272_v33 = vrot.slane %v271_v22, 1  ;;  %v298_v34 = vrot.slane %v297_v23, 2  ;;  %v223_v38 = vrot.slane %v222_v27, 1 }
 0x136   :  { %v208_v35 = vmul.f32 %v186_v24, %v80_v28  ;;  %v303_v39 = vrot.slane %v302_v29, 4  ;;  %v204_v40 = vmul.f32 %v158_v25, %v76_v30  ;;  %v226_v41 = vrot.slane %v225_v32, 4 }
 0x137   :  { %v278_v44 = vadd.f32 %v277_v31, %v276_v20  ;;  %v273_v47 = vadd.f32 %v272_v33, %v271_v22  ;;  %v299_v48 = vadd.f32 %v298_v34, %v297_v23  ;;  %v224_v53 = vadd.f32 %v223_v38, %v222_v27  ;;  %v72_v31 = vld [vmem:[#allocation2 + $0x30] sm:$0xff] }
 0x138   :  { %v281_v45 = vsel %vm210_vm3, %v204_v40, 0.0  ;;  %v309_v49 = vsel %vm210_vm3, %v208_v35, 0.0  ;;  %v304_v54 = vadd.f32 %v303_v39, %v302_v29  ;;  %v227_v56 = vadd.f32 %v226_v41, %v225_v32 }
 0x139   :  { %v109_v36 = vpop.permute.xlu1 %108  ;;  %v193_v43 = vpop.permute.xlu0 %192  ;;  %v282_v50 = vrot.slane %v281_v45, 4  ;;  %v279_v59 = vrot.slane %v278_v44, 1  ;;  %v310_v60 = vrot.slane %v309_v49, 4  ;;  %v331_v63 = vpack.c.bf16 %v273_v47, %v273_v47 }
 0x13a   :  { %v209_v55 = vmul.f32 %v193_v43, %v81_v42  ;;  %v197_v58 = vmul.f32 %v109_v36, %v69_v46  ;;  %v300_v0 = vrot.slane %v299_v48, 1  ;;  %v323_v5 = vpack.c.bf16 %v656_v52, %v656_v52 }
 0x13b   :  { %v283_v57 = vadd.f32 %v282_v50, %v281_v45  ;;  %v324_v6 = vpack.c.bf16 %v224_v53, %v224_v53  ;;  %v305_v7 = vrot.slane %v304_v54, 2  ;;  %v228_v9 = vrot.slane %v227_v56, 2 }
 0x13c   :  { %v316_v61 = vsel %vm210_vm3, %v209_v55, 0.0  ;;  %v232_v2 = vsel %vm210_vm3, %v197_v58, 0.0  ;;  %v280_v13 = vadd.f32 %v279_v59, %v278_v44  ;;  %v311_v14 = vadd.f32 %v310_v60, %v309_v49  ;;  %v73_v49 = vld [vmem:[#allocation2 + $0x38] sm:$0xff] }
 0x13d   :  { %v165_v51 = vpop.permute.xlu1 %164  ;;  %v284_v1 = vrot.slane %v283_v57, 2  ;;  %v233_v8 = vrot.slane %v232_v2, 4  ;;  %v317_v11 = vrot.slane %v316_v61, 4  ;;  %v662_v17 = vunpack.c.l.b16 %v331_v63 }
 0x13e   :  { %v205_v12 = vmul.f32 %v165_v51, %v77_v62  ;;  %v664_v18 = vadd.f32 %v300_v0, %v299_v48  ;;  %v306_v23 = vadd.f32 %v305_v7, %v304_v54  ;;  %v668_v27 = vunpack.c.l.b16 %v324_v6 }
 0x13f   :  { %v285_v10 = vadd.f32 %v284_v1, %v283_v57  ;;  %v234_v15 = vadd.f32 %v233_v8, %v232_v2  ;;  %v229_v28 = vadd.f32 %v228_v9, %v227_v56  ;;  %v318_v29 = vadd.f32 %v317_v11, %v316_v61 }
 0x140   :  { %v288_v20 = vsel %vm210_vm3, %v205_v12, 0.0  ;;  %v332_v32 = vpack.c.bf16 %v280_v13, %v280_v13  ;;  %v312_v33 = vrot.slane %v311_v14, 2  ;;  %v335_v36 = vpack.c.bf16 %v664_v18, %v664_v18 }
 0x141   :  { %v116_v4 = vpop.permute.xlu1 %115  ;;  %v286_v19 = vrot.slane %v285_v10, 1  ;;  %v235_v24 = vrot.slane %v234_v15, 2  ;;  %v289_v25 = vrot.slane %v288_v20, 4  ;;  %v307_v41 = vrot.slane %v306_v23, 1 }
 0x142   :  { %v198_v16 = vmul.f32 %v116_v4, %v70_v3  ;;  %v230_v45 = vrot.slane %v229_v28, 1  ;;  %v319_v46 = vrot.slane %v318_v29, 2  ;;  %v375_v50 = vunpack.c.l.b16 %v332_v32 }
 0x143   :  { %v290_v34 = vadd.f32 %v289_v25, %v288_v20  ;;  %v287_v37 = vadd.f32 %v286_v19, %v285_v10  ;;  %v236_v38 = vadd.f32 %v235_v24, %v234_v15  ;;  %v313_v51 = vadd.f32 %v312_v33, %v311_v14 }
 0x144   :  { %v239_v26 = vsel %vm210_vm3, %v198_v16, 0.0  ;;  %v308_v60 = vadd.f32 %v307_v41, %v306_v23  ;;  %v231_v0 = vadd.f32 %v230_v45, %v229_v28  ;;  %v320_v1 = vadd.f32 %v319_v46, %v318_v29 }
 0x145   :  { %v123_v22 = vpop.permute.xlu1 %122  ;;  %v240_v30 = vrot.slane %v239_v26, 4  ;;  %v291_v42 = vrot.slane %v290_v34, 2  ;;  %v333_v55 = vpack.c.bf16 %v287_v37, %v287_v37  ;;  %v237_v56 = vrot.slane %v236_v38, 1 }
 0x146   :  { %v199_v35 = vmul.f32 %v123_v22, %v71_v21  ;;  %v314_v4 = vrot.slane %v313_v51, 1  ;;  %v396_v13 = vsel %vm382_vm4, %v375_v50, %v662_v17  ;;  %v336_v18 = vpack.c.bf16 %v308_v60, %v308_v60 }
 0x147   :  { %v241_v39 = vadd.f32 %v240_v30, %v239_v26  ;;  %v292_v53 = vadd.f32 %v291_v42, %v290_v34  ;;  %v376_v9 = vunpack.c.l.b16 %v333_v55  ;;  %v238_v10 = vadd.f32 %v237_v56, %v236_v38 }
 0x148   :  { %v246_v43 = vsel %vm210_vm3, %v199_v35, 0.0  ;;  %v321_v19 = vrot.slane %v320_v1, 1  ;;  %v325_v22 = vpack.c.bf16 %v231_v0, %v231_v0  ;;  %v315_v23 = vadd.f32 %v314_v4, %v313_v51  ;;  %v495_v0 = vld [vmem:[%s704_s5] ss:$0 sm:$0xff]  ;;  %s585_s5 = smov [#allocation5]  }
 0x149   :  { %v130_v40 = vpop.permute.xlu1 %129  ;;  %v242_v47 = vrot.slane %v241_v39, 2  ;;  %v247_v48 = vrot.slane %v246_v43, 4  ;;  %v293_v61 = vrot.slane %v292_v53, 1  ;;  %v397_v26 = vsel %vm384_vm5, %v376_v9, %v396_v13  ;;  %s477_s17 = sshll.u32 %s585_s5, 4  ;;  %s478_s17 = int_to_ptr.vmem [resolvable:$true] %s477_s17 }
 0x14a   :  { %v200_v44 = vmul.f32 %v130_v40, %v72_v31  ;;  %v326_v28 = vpack.c.bf16 %v238_v10, %v238_v10  ;;  %v378_v31 = vunpack.c.l.b16 %v335_v36  ;;  %v366_v34 = vunpack.c.l.b16 %v323_v5  ;;  %s550_s18 = scalar_lea.vmem %s478_s17, 256  ;;  %p555_p7 = scmp.lt.s32.totalorder %s478_s17, %s478_s17 }
 0x14b   :  { %v243_v57 = vadd.f32 %v242_v47, %v241_v39  ;;  %v248_v58 = vadd.f32 %v247_v48, %v246_v43  ;;  %v294_v6 = vadd.f32 %v293_v61, %v292_v53  ;;  %v322_v35 = vadd.f32 %v321_v19, %v320_v1  ;;  %p551_p6 = scmp.ne.s32.totalorder %s478_s17, %s550_s18  ;;  %p556_p8 = scmp.lt.s32.totalorder %s550_s18, %s550_s18 }
 0x14c   :  { %v253_v54 = vsel %vm210_vm3, %v200_v44, 0.0  ;;  %v368_v39 = vunpack.c.l.b16 %v325_v22  ;;  %v337_v40 = vpack.c.bf16 %v315_v23, %v315_v23  ;;  %v379_v43 = vunpack.c.l.b16 %v336_v18 }
 0x14d   :  { %v137_v59 = vpop.permute.xlu1 %136  ;;  %v254_v62 = vrot.slane %v253_v54, 4  ;;  %v244_v2 = vrot.slane %v243_v57, 1  ;;  %v249_v3 = vrot.slane %v248_v58, 2  ;;  %v334_v14 = vpack.c.bf16 %v294_v6, %v294_v6  ;;  %p557_p9 = por %p556_p8, %p555_p7 }
 0x14e   :  { %v201_v63 = vmul.f32 %v137_v59, %v73_v49  ;;  %v369_v44 = vunpack.c.l.b16 %v326_v28  ;;  %v383_v36 = vsel %vm382_vm4, %v668_v27, %v366_v34  ;;  %v338_v48 = vpack.c.bf16 %v322_v35, %v322_v35 }
 0x14f   :  { %v255_v7 = vadd.f32 %v254_v62, %v253_v54  ;;  %v250_v11 = vadd.f32 %v249_v3, %v248_v58  ;;  %v245_v15 = vadd.f32 %v244_v2, %v243_v57  ;;  %v377_v24 = vunpack.c.l.b16 %v334_v14  ;;  %p558_p10 = pnand %p557_p9, %p551_p6 }
 0x150   :  { %v260_v8 = vsel %vm210_vm3, %v201_v63, 0.0  ;;  %v385_v50 = vsel %vm384_vm5, %v368_v39, %v383_v36  ;;  %v380_v51 = vunpack.c.l.b16 %v337_v40  ;;  %v381_v57 = vunpack.c.l.b16 %v338_v48 }
 0x151   :  { %v261_v12 = vrot.slane %v260_v8, 4  ;;  %v256_v16 = vrot.slane %v255_v7, 2  ;;  %v251_v20 = vrot.slane %v250_v11, 1  ;;  %v398_v32 = vsel %vm386_vm6, %v377_v24, %v397_v26 }
 0x152   :  { %v327_v17 = vpack.c.bf16 %v245_v15, %v245_v15  ;;  %v399_v42 = vsel %vm388_vm7, %v378_v31, %v398_v32  ;;  %v387_v54 = vsel %vm386_vm6, %v369_v44, %v385_v50 }
 0x153   :  { %v262_v21 = vadd.f32 %v261_v12, %v260_v8  ;;  %v257_v25 = vadd.f32 %v256_v16, %v255_v7  ;;  %v252_v29 = vadd.f32 %v251_v20, %v250_v11  ;;  %v400_v49 = vsel %vm390_vm8, %v379_v43, %v399_v42 }
 0x154   :  { %v370_v46 = vunpack.c.l.b16 %v327_v17  ;;  %v401_v27 = vsel %vm392_vm9, %v380_v51, %v400_v49 }
 0x155   :  { %v263_v30 = vrot.slane %v262_v21, 2  ;;  %v258_v33 = vrot.slane %v257_v25, 1  ;;  %v328_v37 = vpack.c.bf16 %v252_v29, %v252_v29  ;;  %v402_v62 = vsel %vm394_vm10, %v381_v57, %v401_v27 }
 0x156   :  { %v389_v56 = vsel %vm388_vm7, %v370_v46, %v387_v54 }
 0x157   :  { %v264_v38 = vadd.f32 %v263_v30, %v262_v21  ;;  %v259_v41 = vadd.f32 %v258_v33, %v257_v25  ;;  %v371_v52 = vunpack.c.l.b16 %v328_v37 }
 0x159   :  { %v265_v45 = vrot.slane %v264_v38, 1  ;;  %v329_v47 = vpack.c.bf16 %v259_v41, %v259_v41  ;;  %v391_v59 = vsel %vm390_vm8, %v371_v52, %v389_v56 }
 0x15b   :  { %v266_v5 = vadd.f32 %v265_v45, %v264_v38  ;;  %v372_v53 = vunpack.c.l.b16 %v329_v47 }
 0x15d   :  { %v330_v55 = vpack.c.bf16 %v266_v5, %v266_v5  ;;  %v393_v60 = vsel %vm392_vm9, %v372_v53, %v391_v59 }
 0x15f   :  { %v373_v58 = vunpack.c.l.b16 %v330_v55 }
 0x161   :  { %v395_v61 = vsel %vm394_vm10, %v373_v58, %v393_v60 }
 0x162   :  { %v403_v63 = vpack.c.b16 %v402_v62, %v395_v61 }
 0x164   :  { %507 = vmatmul.mubr.msk.bf16.vlgmr.msra.gmra.mxu0 %vm210_vm3, %v403_v63 }
 0x224   :  { %v453_v1 = vpop.f32.mrf.mxu0 }
 0x225   :  { %v454_v2 = vadd.f32 %v495_v0, %v453_v1 }
 0x226   :  { %v508_v3 = vpop.f32.mrf.mxu0 }
 0x227   :  { %v460_v4 = vsub.f32 0.0, %v454_v2 }
 0x228   :  { %v456_v6 = vpop.f32.mrf.mxu0 }
 0x229   :  { %v462_v7 = vmul.f32 1.442695, %v460_v4  ;;  %v457_v8 = vadd.f32 %v495_v0, %v456_v6 }
 0x22a   :  { %v509_v9 = vpop.f32.mrf.mxu0 }
 0x22b   :  { %530 = vpow2.f32 %v462_v7  ;;  %v461_v10 = vsub.f32 0.0, %v457_v8 }
 0x22d   :  { %v464_v11 = vmul.f32 1.442695, %v461_v10 }
 0x22f   :  { %532 = vpow2.f32 %v464_v11 }
 0x238   :  { %v531_v12 = vpop.eup %530 }
 0x239   :  { %v466_v13 = vadd.f32 1.0, %v531_v12 }
 0x23b   :  { %534 = vrcp.f32 %v466_v13 }
 0x23c   :  { %v533_v14 = vpop.eup %532 }
 0x23d   :  { %v467_v15 = vadd.f32 1.0, %v533_v14 }
 0x23f   :  { %536 = vrcp.f32 %v467_v15 }
 0x248   :  { %v535_v16 = vpop.eup %534 }
 0x249   :  { %470 = vst [vmem:[#allocation5] sm:$0xff] %v535_v16 }
 0x24c   :  { %v537_v18 = vpop.eup %536 }
 0x24d   :  { %471 = vst [vmem:[#allocation5 + $0x8] sm:$0xff] %v537_v18 }
 0x24e   :  { %561 = shalt.err (!%p558_p10)
}
 0x24f   :  { %s586_s19 = smov 128   ;;  %s587_s20 = smov 8  }
 0x250   :  { %483 = dma.vmem_to_hbm [thread:$0]  %s478_s17, 256, %s705_s6, [#allocation6], %s586_s19, %s586_s19, %s587_s20  }
 0x251   :  { %576 = dma.done.wait [#allocation6], 256  }
 0x252   :  { %577 = vsyncadd [#allocation6], 4294967040 }
 0x253   :  { %487 = vsyncpa [#allocation6], 1 }

</bundles_post_ra>
